<compile_context>
chip_gen: v6e
topology: v6e:2x2x1
jax: 0.10.0
libtpu: 0.0.40
codegen_flags: <defaults>
</compile_context>

<pallas_src>
import functools

import jax
import jax.numpy as jnp
from jax.experimental import pallas as pl
from jax.experimental.pallas import tpu as pltpu

_LANES = 128
# (4096, 128) f32 block = 2 MiB; 2 inputs x 2 pipeline buffers = 8 MiB,
# comfortably inside the default scoped VMEM on v5e (16 MiB) and v7x (32 MiB).
_TILE_M_MAX = 4096


def _round_up(x: int, m: int) -> int:
    return (x + m - 1) // m * m


def _content_loss_kernel(inv_n: float, x_ref, t_ref, w_ref, loss_ref):
    """One grid step: accumulate sum((w*(x - t))^2); finalize on the last step."""
    step = pl.program_id(0)

    @pl.when(step == 0)
    def _init():
        loss_ref[0, 0] = jnp.float32(0.0)

    w = w_ref[0, 0]
    x = x_ref[...].astype(jnp.float32)
    t = t_ref[...].astype(jnp.float32)
    d = (x - t) * w                      # == w*x - w*t_raw  (target pre-scaled by weight)
    loss_ref[0, 0] += jnp.sum(d * d)

    @pl.when(step == pl.num_programs(0) - 1)
    def _finalize():
        # Divide once by the TOTAL element count (not per-block size).
        loss_ref[0, 0] = loss_ref[0, 0] * jnp.float32(inv_n)


def content_loss_forward(x_nchw, target_raw, weight):
    """Mirror of ContentLoss.forward.

    Returns (output, loss):
      output == x_nchw (identity passthrough, no copy / no extra HBM write)
      loss   == mean((x*weight - target_raw*weight)**2)  (scalar f32)
    """
    total = x_nchw.size
    assert total % _LANES == 0, "demo shapes are chosen so total elems % 128 == 0"
    # TODO(synk): fully general shapes would need masked handling of a ragged last lane-row.
    m = total // _LANES

    tile_m = min(_TILE_M_MAX, _round_up(m, 8))
    m_pad = _round_up(m, tile_m)

    x2 = x_nchw.reshape(m, _LANES)
    t2 = target_raw.reshape(m, _LANES)
    if m_pad != m:
        # Zero rows contribute 0 to the squared-error sum; divisor stays `total`.
        x2 = jnp.pad(x2, ((0, m_pad - m), (0, 0)))
        t2 = jnp.pad(t2, ((0, m_pad - m), (0, 0)))

    w_arr = jnp.asarray(weight, dtype=jnp.float32).reshape(1, 1)
    num_blocks = m_pad // tile_m

    elem_bytes = jnp.dtype(x2.dtype).itemsize + jnp.dtype(t2.dtype).itemsize
    cost = pl.CostEstimate(
        flops=3 * total,
        transcendentals=0,
        bytes_accessed=elem_bytes * total + 8,
    )

    loss = pl.pallas_call(
        functools.partial(_content_loss_kernel, 1.0 / float(total)),
        out_shape=jax.ShapeDtypeStruct((1, 1), jnp.float32),
        grid_spec=pltpu.PrefetchScalarGridSpec(
            num_scalar_prefetch=0,
            grid=(num_blocks,),
            in_specs=[
                pl.BlockSpec((tile_m, _LANES), lambda i: (i, 0)),   # x tile
                pl.BlockSpec((tile_m, _LANES), lambda i: (i, 0)),   # target tile
                pl.BlockSpec(memory_space=pltpu.SMEM),              # weight scalar
            ],
            out_specs=pl.BlockSpec(memory_space=pltpu.SMEM),        # scalar loss (accumulator)
        ),
        compiler_params=pltpu.CompilerParams(
            dimension_semantics=("arbitrary",),  # reduction axis with resident accumulator
        ),
        cost_estimate=cost,
    )(x2, t2, w_arr)

    # Module returns its input unchanged — no kernel copy, no extra HBM traffic.
    return x_nchw, loss[0, 0]


if __name__ == "__main__":
    key = jax.random.PRNGKey(0)
    kx, kt = jax.random.split(key)

    # Small NCHW shapes consistent with a feature-map content loss.
    B, C, H, W = 2, 4, 16, 16
    weight = 0.75

    x = jax.random.normal(kx, (B, C, H, W), dtype=jnp.float32)
    target_raw = jax.random.normal(kt, (B, C, H, W), dtype=jnp.float32)

    out, loss = content_loss_forward(x, target_raw, weight)
    out = jax.block_until_ready(out)
    loss = jax.block_until_ready(loss)

    # Reference check (plain JAX, mirrors nn.MSELoss(input*w, target.detach()*w)).
    ref_loss = jnp.mean((x * weight - target_raw * weight) ** 2)
    assert jnp.allclose(out, x), "passthrough output mismatch"
    assert jnp.allclose(loss, ref_loss, rtol=1e-5, atol=1e-6), (
        f"loss mismatch: {loss} vs {ref_loss}"
    )

    print("KERNEL_OK")
</pallas_src>

<mosaic_0001>
module attributes {stable_mosaic.version = 11 : i64} {
  func.func @_content_loss_kernel(%arg0: i32, %arg1: memref<16x128xf32, #tpu.memory_space<vmem>>, %arg2: memref<16x128xf32, #tpu.memory_space<vmem>>, %arg3: memref<1x1xf32, #tpu.memory_space<smem>>, %arg4: memref<1x1xf32, #tpu.memory_space<smem>>) attributes {dimension_semantics = [#tpu.dimension_semantics<arbitrary>], iteration_bounds = array<i64: 1>, scalar_prefetch = 0 : i64, scratch_operands = 0 : i64, tpu.core_type = #tpu.core_type<tc>, window_params = [{transform_indices = @transform_0, window_bounds = array<i64: 16, 128>}, {transform_indices = @transform_1, window_bounds = array<i64: 16, 128>}, {transform_indices = @transform_2, window_bounds = array<i64: 1, 1>}, {transform_indices = @transform_3, window_bounds = array<i64: 1, 1>}]} {
    %c0_i32 = arith.constant 0 : i32
    %0 = arith.cmpi eq, %arg0, %c0_i32 : i32
    %1 = arith.extui %0 : i1 to i32
    %c0_i32_0 = arith.constant 0 : i32
    %2 = arith.cmpi ne, %1, %c0_i32_0 : i32
    scf.if %2 {
      %cst_12 = arith.constant 0.000000e+00 : f32
      %c0_13 = arith.constant 0 : index
      %c0_14 = arith.constant 0 : index
      %20 = memref.load %arg4[%c0_13, %c0_14] : memref<1x1xf32, #tpu.memory_space<smem>>
      memref.store %cst_12, %arg4[%c0_13, %c0_14] : memref<1x1xf32, #tpu.memory_space<smem>>
    } else {
    }
    %c0 = arith.constant 0 : index
    %c0_1 = arith.constant 0 : index
    %3 = memref.load %arg3[%c0, %c0_1] : memref<1x1xf32, #tpu.memory_space<smem>>
    %c0_2 = arith.constant 0 : index
    %c0_3 = arith.constant 0 : index
    %4 = vector.load %arg1[%c0_2, %c0_3] : memref<16x128xf32, #tpu.memory_space<vmem>>, vector<16x128xf32>
    %c0_4 = arith.constant 0 : index
    %c0_5 = arith.constant 0 : index
    %5 = vector.load %arg2[%c0_4, %c0_5] : memref<16x128xf32, #tpu.memory_space<vmem>>, vector<16x128xf32>
    %6 = arith.subf %4, %5 : vector<16x128xf32>
    %7 = vector.broadcast %3 : f32 to vector<16x128xf32>
    %8 = arith.mulf %6, %7 : vector<16x128xf32>
    %c0_6 = arith.constant 0 : index
    %c0_7 = arith.constant 0 : index
    %9 = memref.load %arg4[%c0_6, %c0_7] : memref<1x1xf32, #tpu.memory_space<smem>>
    %10 = arith.mulf %8, %8 : vector<16x128xf32>
    %11 = vector.shape_cast %10 : vector<16x128xf32> to vector<1x16x128xf32>
    %cst = arith.constant dense<0.000000e+00> : vector<1xf32>
    %12 = vector.multi_reduction <add>, %11, %cst [1, 2] : vector<1x16x128xf32> to vector<1xf32>
    %13 = vector.shape_cast %12 : vector<1xf32> to vector<1x1x1xf32>
    %14 = vector.extract %13[0, 0, 0] : f32 from vector<1x1x1xf32>
    %15 = arith.addf %9, %14 : f32
    %c0_8 = arith.constant 0 : index
    %c0_9 = arith.constant 0 : index
    %16 = memref.load %arg4[%c0_8, %c0_9] : memref<1x1xf32, #tpu.memory_space<smem>>
    memref.store %15, %arg4[%c0_8, %c0_9] : memref<1x1xf32, #tpu.memory_space<smem>>
    %c0_i32_10 = arith.constant 0 : i32
    %17 = arith.cmpi eq, %arg0, %c0_i32_10 : i32
    %18 = arith.extui %17 : i1 to i32
    %c0_i32_11 = arith.constant 0 : i32
    %19 = arith.cmpi ne, %18, %c0_i32_11 : i32
    scf.if %19 {
      %c0_12 = arith.constant 0 : index
      %c0_13 = arith.constant 0 : index
      %20 = memref.load %arg4[%c0_12, %c0_13] : memref<1x1xf32, #tpu.memory_space<smem>>
      %cst_14 = arith.constant 4.8828125E-4 : f32
      %21 = arith.mulf %20, %cst_14 : f32
      %c0_15 = arith.constant 0 : index
      %c0_16 = arith.constant 0 : index
      %22 = memref.load %arg4[%c0_15, %c0_16] : memref<1x1xf32, #tpu.memory_space<smem>>
      memref.store %21, %arg4[%c0_15, %c0_16] : memref<1x1xf32, #tpu.memory_space<smem>>
    } else {
    }
    return
  }
  func.func @transform_0(%arg0: i32) -> (i32, i32) {
    %c0_i32 = arith.constant 0 : i32
    %c0_i32_0 = arith.constant 0 : i32
    return %arg0, %c0_i32 : i32, i32
  }
  func.func @transform_1(%arg0: i32) -> (i32, i32) {
    %c0_i32 = arith.constant 0 : i32
    %c0_i32_0 = arith.constant 0 : i32
    return %arg0, %c0_i32 : i32, i32
  }
  func.func @transform_2(%arg0: i32) -> (i32, i32) {
    %c0_i32 = arith.constant 0 : i32
    %c0_i32_0 = arith.constant 0 : i32
    %c0_i32_1 = arith.constant 0 : i32
    return %c0_i32, %c0_i32_0 : i32, i32
  }
  func.func @transform_3(%arg0: i32) -> (i32, i32) {
    %c0_i32 = arith.constant 0 : i32
    %c0_i32_0 = arith.constant 0 : i32
    %c0_i32_1 = arith.constant 0 : i32
    return %c0_i32, %c0_i32_0 : i32, i32
  }
}

</mosaic_0001>

<bundles_post_ra>
// kernel: tpu_custom_call.1
= control target key start
LH: loop header
LB: loop body
LE: loop exit
PB: predicated region body
PF: predicated region fallthrough
CT: control target
= control target key end

     0   :  { %9 = vsyncpa [#allocation4], 0  ;;  %s196_s0 = inlined_call_operand.hbm [shape: f32[16,128], index: 0, kind: input, shape index: {}]   ;;  %s197_s1 = inlined_call_operand.hbm [shape: f32[16,128], index: 1, kind: input, shape index: {}]   ;;  %s198_s2 = inlined_call_operand.<no memory space> [shape: f32[1,1], index: 2, kind: input, shape index: {}]   ;;  %s199_s3 = inlined_call_operand.hbm [shape: f32[1,1], index: 3, kind: output, shape index: {}]  }
   0x1   :  { %10 = vsyncpa [#allocation7], 0 }
   0x2   :  { %11 = vsyncpa [#allocation5], 0  ;;  %s159_s12 = smov [#allocation3]  }
   0x3   :  { %s17_s13 = sshll.u32 %s159_s12, 4  ;;  %s18_s13 = int_to_ptr.vmem [resolvable:$true] %s17_s13 }
   0x4   :  { %s113_s14 = scalar_lea.vmem %s18_s13, 256  ;;  %p118_p1 = scmp.lt.s32.totalorder %s18_s13, %s18_s13 }
   0x5   :  { %p114_p0 = scmp.ne.s32.totalorder %s18_s13, %s113_s14  ;;  %p119_p2 = scmp.lt.s32.totalorder %s113_s14, %s113_s14 }
   0x7   :  { %p120_p3 = por %p119_p2, %p118_p1 }
   0x9   :  { %p121_p4 = pnand %p120_p3, %p114_p0 }
   0xb   :  { %124 = shalt.err (!%p121_p4)
}
   0xc   :  { %s160_s15 = smov 128   ;;  %s161_s16 = smov 8  }
   0xd   :  { %23 = dma.hbm_to_vmem [thread:$0]  %s196_s0, 256, %s18_s13, [#allocation4], %s160_s15, %s160_s15, %s161_s16  }
   0xe   :  { %s162_s19 = smov [#allocation6]  }
   0xf   :  { %s29_s20 = sshll.u32 %s162_s19, 4  ;;  %s30_s20 = int_to_ptr.vmem [resolvable:$true] %s29_s20 }
  0x10   :  { %s133_s21 = scalar_lea.vmem %s30_s20, 256  ;;  %p138_p6 = scmp.lt.s32.totalorder %s30_s20, %s30_s20 }
  0x11   :  { %p134_p5 = scmp.ne.s32.totalorder %s30_s20, %s133_s21  ;;  %p139_p7 = scmp.lt.s32.totalorder %s133_s21, %s133_s21 }
  0x13   :  { %p140_p8 = por %p139_p7, %p138_p6 }
  0x15   :  { %p141_p9 = pnand %p140_p8, %p134_p5 }
  0x17   :  { %144 = shalt.err (!%p141_p9)
}
  0x18   :  { %35 = dma.hbm_to_vmem [thread:$0]  %s197_s1, 256, %s30_s20, [#allocation7], %s160_s15, %s160_s15, %s161_s16  }
  0x19   :  { %153 = dma.done.wait [#allocation4], 256  }
  0x1a   :  { %154 = vsyncadd [#allocation4], 4294967040 }
  0x1b   :  { %155 = dma.done.wait [#allocation7], 256  }
  0x1c   :  { %156 = vsyncadd [#allocation7], 4294967040  ;;  %v51_v0 = vld [vmem:[#allocation3] sm:$0xff]  ;;  %v52_v1 = vld [vmem:[#allocation3 + $0x8] sm:$0xff]  ;;  %v57_v3 = vstv %s198_s2  ;;  %s163_s2 = smov [#allocation8]  }
  0x1d   :  { %v53_v2 = vld [vmem:[#allocation6] sm:$0xff]  ;;  %v54_v4 = vld [vmem:[#allocation6 + $0x8] sm:$0xff] }
  0x1e   :  { %v55_v5 = vsub.f32 %v51_v0, %v53_v2  ;;  %v56_v6 = vsub.f32 %v52_v1, %v54_v4 }
  0x20   :  { %v58_v7 = vmul.f32 %v57_v3, %v55_v5  ;;  %v59_v8 = vmul.f32 %v57_v3, %v56_v6 }
  0x22   :  { %v61_v9 = vmul.f32 %v58_v7, %v58_v7  ;;  %v62_v10 = vmul.f32 %v59_v8, %v59_v8 }
  0x24   :  { %v63_v11 = vadd.f32 %v62_v10, %v61_v9 }
  0x26   :  { %64 = vadd.xlane.f32.xlu0 %v63_v11 }
  0xaf   :  { %v65_v12 = vpop.xlane.xlu0 %64 }
  0xb0   :  { %v66_v13 = vrot.slane %v65_v12, 4 }
  0xb2   :  { %v67_v14 = vadd.f32 %v66_v13, %v65_v12 }
  0xb4   :  { %v68_v15 = vrot.slane %v67_v14, 2 }
  0xb6   :  { %v69_v16 = vadd.f32 %v68_v15, %v67_v14 }
  0xb8   :  { %v70_v17 = vrot.slane %v69_v16, 1 }
  0xba   :  { %v71_v18 = vadd.f32 %v70_v17, %v69_v16 }
  0xbc   :  { %97 = vpush %v71_v18 }
  0xed   :  { %s98_s1 = spop %97 }
  0xee   :  { %s80_s25 = smul.f32 0.00048828125, %s98_s1 }
  0xf0   :  { %81 = sst [smem:[#allocation8]] %s80_s25 }
  0xf1   :  { %89 = dma.smem_to_hbm %s163_s2, 16, %s199_s3, [#allocation5]  }
  0xf2   :  { %157 = dma.done.wait [#allocation5], 16  }
  0xf3   :  { %158 = vsyncadd [#allocation5], 4294967280 }
  0xf4   :  { %93 = sfence }
  0xf5   :  { %94 = vsyncpa [#allocation4], 1 }
  0xf6   :  { %95 = vsyncpa [#allocation7], 1 }
  0xf7   :  { %96 = vsyncpa [#allocation5], 1 }

</bundles_post_ra>
